<compile_context>
chip_gen: v7x
topology: tpu7x:2x2x1
jax: 0.10.0
libtpu: 0.0.40
codegen_flags: <defaults>
</compile_context>

<pallas_src>
import jax
import jax.numpy as jnp
from jax.experimental import pallas as pl
from jax.experimental.pallas import tpu as pltpu

LANE = 128      # TPU lane width; hidden and output feature dims are padded to this.
SUBLANE = 8     # batch-tile granularity


def _round_up(x, m):
    return (x + m - 1) // m * m


def _cdiv(a, b):
    return (a + b - 1) // b


def dqn_kernel(x_ref, w1_ref, wp_ref, b_ref, o_ref):
    """Fused 4-layer MLP on one (TM, state_size) batch tile.

    x_ref : (TM, state_size)       input tile (bf16, pre-cast in wrapper)
    w1_ref: (state_size, LANE)     fc1 weight (bf16), lane-dense output
    wp_ref: (3, LANE, LANE)        fc2/fc3/fc4 weights, zero-padded (bf16)
    b_ref : (4, LANE)              biases, one row per layer, zero-padded (f32)
    o_ref : (TM, LANE)             lane-dense padded output (bf16)
    """
    cdt = w1_ref.dtype            # matmul input dtype (bf16 by default)
    b = b_ref[...]                # (4, LANE) f32

    # fc1 + ReLU   (dropout dr1 is identity at inference)
    h = jnp.dot(x_ref[...], w1_ref[...], preferred_element_type=jnp.float32) + b[0:1, :]
    h = jnp.maximum(h, 0.0)

    # fc2 + ReLU   (dropout dr2 is identity at inference)
    h = jnp.dot(h.astype(cdt), wp_ref[0], preferred_element_type=jnp.float32) + b[1:2, :]
    h = jnp.maximum(h, 0.0)

    # fc3 + ReLU
    h = jnp.dot(h.astype(cdt), wp_ref[1], preferred_element_type=jnp.float32) + b[2:3, :]
    h = jnp.maximum(h, 0.0)

    # fc4 (no activation); padded output columns stay exactly 0 and are cropped
    # by the wrapper, so they never leak into an argmax over Q-values.
    o_ref[...] = (jnp.dot(h.astype(cdt), wp_ref[2], preferred_element_type=jnp.float32)
                  + b[3:4, :]).astype(o_ref.dtype)


def dq_network_forward(state, packed_params, action_size, *, tm=1024,
                       out_dtype=jnp.float32):
    """state: (batch, state_size) f32; packed_params = (w1, wp, bp) from pack_params."""
    w1, wp, bp = packed_params
    batch, state_size = state.shape
    cdt = w1.dtype

    # ---- batch tiling -------------------------------------------------------
    # Balanced tiles: pick the tile count first, then size tiles to fit, so a
    # ragged batch wastes <8 rows per tile (vs rounding batch up to a multiple
    # of tm). Force >=2 tiles when batch > 8 so the "parallel" grid axis can be
    # split across v7x's two TensorCores (extra step is near-free on v5e/v6e).
    min_tiles = 2 if batch > SUBLANE else 1
    n_tiles = max(_cdiv(batch, tm), min_tiles)
    tm = _round_up(_cdiv(batch, n_tiles), SUBLANE)
    padded_batch = n_tiles * tm

    # Pre-cast the input to the compute dtype (bf16): halves the input HBM read
    # and drops the in-kernel full-tile cast (fc1 consumes bf16 anyway).
    x = state.astype(cdt)
    if padded_batch != batch:
        x = jnp.pad(x, ((0, padded_batch - batch), (0, 0)))

    flops = 2 * padded_batch * (state_size * LANE + 3 * LANE * LANE)
    bytes_accessed = (x.size * x.dtype.itemsize
                      + w1.size * w1.dtype.itemsize
                      + wp.size * wp.dtype.itemsize
                      + bp.size * bp.dtype.itemsize
                      + padded_batch * LANE * jnp.dtype(cdt).itemsize)

    out = pl.pallas_call(
        dqn_kernel,
        # bf16 writeback: the padded (batch, 128) output slab is the dominant
        # HBM term; halving it cuts total traffic ~45% on large batches.
        out_shape=jax.ShapeDtypeStruct((padded_batch, LANE), cdt),
        grid=(n_tiles,),
        in_specs=[
            # batch-tiled input
            pl.BlockSpec((tm, state_size), lambda i: (i, 0)),
            # weights / biases stay VMEM-resident across all grid steps
            pl.BlockSpec((state_size, LANE), lambda i: (0, 0)),
            pl.BlockSpec((3, LANE, LANE), lambda i: (0, 0, 0)),
            pl.BlockSpec((4, LANE), lambda i: (0, 0)),
        ],
        out_specs=pl.BlockSpec((tm, LANE), lambda i: (i, 0)),
        compiler_params=pltpu.CompilerParams(
            dimension_semantics=("parallel",),  # shard batch tiles across TCs on v7x
        ),
        cost_estimate=pl.CostEstimate(flops=flops, transcendentals=0,
                                      bytes_accessed=bytes_accessed),
    )(x, w1, wp, bp)

    # Crop padded rows/columns; the cropped slab is tiny (batch x action_size),
    # so the optional upcast to f32 costs nothing.
    return out[:batch, :action_size].astype(out_dtype)


# ----------------------------- parameters -----------------------------------

def init_linear(key, fan_in, fan_out):
    """PyTorch nn.Linear default init: U(-1/sqrt(fan_in), 1/sqrt(fan_in)).
    Weight stored as (fan_in, fan_out), i.e. transposed vs. PyTorch."""
    kw, kb = jax.random.split(key)
    bound = 1.0 / jnp.sqrt(jnp.float32(fan_in))
    w = jax.random.uniform(kw, (fan_in, fan_out), jnp.float32, -bound, bound)
    b = jax.random.uniform(kb, (fan_out,), jnp.float32, -bound, bound)
    return w, b


def make_params(key, state_size, action_size, fc_units=(128, 64, 32)):
    dims = (state_size,) + tuple(fc_units) + (action_size,)
    keys = jax.random.split(key, len(dims) - 1)
    return tuple(init_linear(k, dims[i], dims[i + 1]) for i, k in enumerate(keys))


def pack_params(params, *, param_dtype=jnp.bfloat16):
    """Zero-pad hidden/output feature dims to LANE=128 and pack for the kernel:
       w1: (state_size, LANE)  param_dtype
       wp: (3, LANE, LANE)     param_dtype   (fc2, fc3, fc4)
       bp: (4, LANE)           f32           (one bias row per layer)
    Padded rows/cols are exactly zero; ReLU(0)=0 keeps padded activations zero,
    so logical results are unchanged."""
    (w1, b1), (w2, b2), (w3, b3), (w4, b4) = params
    assert w1.shape[1] <= LANE
    for w, _ in params[1:]:
        assert w.shape[0] <= LANE and w.shape[1] <= LANE, "hidden/output dims must be <= 128"

    def pad_w(w, rows, cols):
        return jnp.pad(w, ((0, rows - w.shape[0]), (0, cols - w.shape[1])))

    def pad_b(b):
        return jnp.pad(b, (0, LANE - b.shape[0]))

    w1p = pad_w(w1, w1.shape[0], LANE).astype(param_dtype)
    wp = jnp.stack([pad_w(w2, LANE, LANE),
                    pad_w(w3, LANE, LANE),
                    pad_w(w4, LANE, LANE)]).astype(param_dtype)
    bp = jnp.stack([pad_b(b1), pad_b(b2), pad_b(b3), pad_b(b4)]).astype(jnp.float32)
    return w1p, wp, bp


# ----------------------------- references -----------------------------------

def reference_forward_packed(state, packed_params, action_size):
    """Plain-JAX reference replicating the kernel's padded / mixed-precision math."""
    w1, wp, bp = packed_params
    cdt = w1.dtype
    h = jnp.dot(state.astype(cdt), w1, preferred_element_type=jnp.float32) + bp[0:1]
    h = jnp.maximum(h, 0.0)
    h = jnp.dot(h.astype(cdt), wp[0], preferred_element_type=jnp.float32) + bp[1:2]
    h = jnp.maximum(h, 0.0)
    h = jnp.dot(h.astype(cdt), wp[1], preferred_element_type=jnp.float32) + bp[2:3]
    h = jnp.maximum(h, 0.0)
    out = jnp.dot(h.astype(cdt), wp[2], preferred_element_type=jnp.float32) + bp[3:4]
    return out[:, :action_size]


def reference_forward_f32(state, params):
    """Unpadded full-f32 reference (original module semantics, eval mode)."""
    h = state
    for i, (w, b) in enumerate(params):
        h = jnp.dot(h, w) + b[None, :]
        if i < len(params) - 1:
            h = jnp.maximum(h, 0.0)
    return h


if __name__ == "__main__":
    key = jax.random.PRNGKey(0)
    k_params, k_state = jax.random.split(key)

    # Small shapes consistent with the module: state_size=8, action_size=4, batch=2.
    batch, state_size, action_size = 2, 8, 4
    fc_units = (128, 64, 32)

    params = make_params(k_params, state_size, action_size, fc_units)
    packed = pack_params(params, param_dtype=jnp.bfloat16)
    state = jax.random.normal(k_state, (batch, state_size), jnp.float32)

    out = dq_network_forward(state, packed, action_size)
    out = jax.block_until_ready(out)
    assert out.shape == (batch, action_size)

    # Check vs a plain-JAX reference with identical padding/precision
    # (tolerance covers the bf16 output rounding).
    ref_packed = reference_forward_packed(state, packed, action_size)
    assert jnp.allclose(out, ref_packed, atol=2e-2, rtol=2e-2)

    # Loose check vs the original f32 module semantics (bf16 weight/output rounding).
    ref_f32 = reference_forward_f32(state, params)
    assert jnp.allclose(out, ref_f32, atol=1e-1, rtol=1e-1)

    # Also exercise a ragged, multi-tile batch (balanced tiling + 2-TC grid path).
    big_batch = 600
    big_state = jax.random.normal(jax.random.PRNGKey(1), (big_batch, state_size), jnp.float32)
    big_out = jax.block_until_ready(dq_network_forward(big_state, packed, action_size))
    big_ref = reference_forward_packed(big_state, packed, action_size)
    assert big_out.shape == (big_batch, action_size)
    assert jnp.allclose(big_out, big_ref, atol=2e-2, rtol=2e-2)

    print("KERNEL_OK")
</pallas_src>

<mosaic_0001>
module attributes {stable_mosaic.version = 11 : i64} {
  func.func @dqn_kernel(%arg0: i32, %arg1: memref<8x8xbf16, #tpu.memory_space<vmem>>, %arg2: memref<8x128xbf16, #tpu.memory_space<vmem>>, %arg3: memref<3x128x128xbf16, #tpu.memory_space<vmem>>, %arg4: memref<4x128xf32, #tpu.memory_space<vmem>>, %arg5: memref<8x128xbf16, #tpu.memory_space<vmem>>) attributes {dimension_semantics = [#tpu.dimension_semantics<parallel>], iteration_bounds = array<i64: 1>, scalar_prefetch = 0 : i64, scratch_operands = 0 : i64, tpu.core_type = #tpu.core_type<tc>, window_params = [{transform_indices = @transform_0, window_bounds = array<i64: 8, 8>}, {pipeline_mode = #tpu.pipeline_mode<synchronous>, transform_indices = @transform_1, window_bounds = array<i64: 8, 128>}, {pipeline_mode = #tpu.pipeline_mode<synchronous>, transform_indices = @transform_2, window_bounds = array<i64: 3, 128, 128>}, {pipeline_mode = #tpu.pipeline_mode<synchronous>, transform_indices = @transform_3, window_bounds = array<i64: 4, 128>}, {transform_indices = @transform_4, window_bounds = array<i64: 8, 128>}]} {
    %c0 = arith.constant 0 : index
    %c0_0 = arith.constant 0 : index
    %0 = vector.load %arg4[%c0, %c0_0] : memref<4x128xf32, #tpu.memory_space<vmem>>, vector<4x128xf32>
    %c0_1 = arith.constant 0 : index
    %c0_2 = arith.constant 0 : index
    %1 = vector.load %arg1[%c0_1, %c0_2] : memref<8x8xbf16, #tpu.memory_space<vmem>>, vector<8x8xbf16>
    %c0_3 = arith.constant 0 : index
    %c0_4 = arith.constant 0 : index
    %2 = vector.load %arg2[%c0_3, %c0_4] : memref<8x128xbf16, #tpu.memory_space<vmem>>, vector<8x128xbf16>
    %cst = arith.constant dense<0.000000e+00> : vector<8x128xf32>
    %3 = tpu.matmul %1, %2, %cst {dimension_numbers = #tpu.dot_dimension_numbers<[1], [0], [0], [1], [0, 0, 1, 1], [], []>} : vector<8x8xbf16>, vector<8x128xbf16>, vector<8x128xf32> -> vector<8x128xf32>
    %4 = vector.extract_strided_slice %0 {offsets = [0, 0], sizes = [1, 128], strides = [1, 1]} : vector<4x128xf32> to vector<1x128xf32>
    %5 = vector.broadcast %4 : vector<1x128xf32> to vector<8x128xf32>
    %6 = arith.addf %3, %5 : vector<8x128xf32>
    %cst_5 = arith.constant 0.000000e+00 : f32
    %7 = vector.broadcast %cst_5 : f32 to vector<8x128xf32>
    %8 = arith.maximumf %6, %7 : vector<8x128xf32>
    %9 = arith.truncf %8 : vector<8x128xf32> to vector<8x128xbf16>
    %c0_6 = arith.constant 0 : index
    %c0_7 = arith.constant 0 : index
    %c0_8 = arith.constant 0 : index
    %10 = vector.load %arg3[%c0_6, %c0_7, %c0_8] : memref<3x128x128xbf16, #tpu.memory_space<vmem>>, vector<1x128x128xbf16>
    %11 = vector.shape_cast %10 : vector<1x128x128xbf16> to vector<128x128xbf16>
    %cst_9 = arith.constant dense<0.000000e+00> : vector<8x128xf32>
    %12 = tpu.matmul %9, %11, %cst_9 {dimension_numbers = #tpu.dot_dimension_numbers<[1], [0], [0], [1], [0, 0, 1, 1], [], []>} : vector<8x128xbf16>, vector<128x128xbf16>, vector<8x128xf32> -> vector<8x128xf32>
    %13 = vector.extract_strided_slice %0 {offsets = [1, 0], sizes = [1, 128], strides = [1, 1]} : vector<4x128xf32> to vector<1x128xf32>
    %14 = vector.broadcast %13 : vector<1x128xf32> to vector<8x128xf32>
    %15 = arith.addf %12, %14 : vector<8x128xf32>
    %cst_10 = arith.constant 0.000000e+00 : f32
    %16 = vector.broadcast %cst_10 : f32 to vector<8x128xf32>
    %17 = arith.maximumf %15, %16 : vector<8x128xf32>
    %18 = arith.truncf %17 : vector<8x128xf32> to vector<8x128xbf16>
    %c1 = arith.constant 1 : index
    %c0_11 = arith.constant 0 : index
    %c0_12 = arith.constant 0 : index
    %19 = vector.load %arg3[%c1, %c0_11, %c0_12] : memref<3x128x128xbf16, #tpu.memory_space<vmem>>, vector<1x128x128xbf16>
    %20 = vector.shape_cast %19 : vector<1x128x128xbf16> to vector<128x128xbf16>
    %cst_13 = arith.constant dense<0.000000e+00> : vector<8x128xf32>
    %21 = tpu.matmul %18, %20, %cst_13 {dimension_numbers = #tpu.dot_dimension_numbers<[1], [0], [0], [1], [0, 0, 1, 1], [], []>} : vector<8x128xbf16>, vector<128x128xbf16>, vector<8x128xf32> -> vector<8x128xf32>
    %22 = vector.extract_strided_slice %0 {offsets = [2, 0], sizes = [1, 128], strides = [1, 1]} : vector<4x128xf32> to vector<1x128xf32>
    %23 = vector.broadcast %22 : vector<1x128xf32> to vector<8x128xf32>
    %24 = arith.addf %21, %23 : vector<8x128xf32>
    %cst_14 = arith.constant 0.000000e+00 : f32
    %25 = vector.broadcast %cst_14 : f32 to vector<8x128xf32>
    %26 = arith.maximumf %24, %25 : vector<8x128xf32>
    %27 = arith.truncf %26 : vector<8x128xf32> to vector<8x128xbf16>
    %c2 = arith.constant 2 : index
    %c0_15 = arith.constant 0 : index
    %c0_16 = arith.constant 0 : index
    %28 = vector.load %arg3[%c2, %c0_15, %c0_16] : memref<3x128x128xbf16, #tpu.memory_space<vmem>>, vector<1x128x128xbf16>
    %29 = vector.shape_cast %28 : vector<1x128x128xbf16> to vector<128x128xbf16>
    %cst_17 = arith.constant dense<0.000000e+00> : vector<8x128xf32>
    %30 = tpu.matmul %27, %29, %cst_17 {dimension_numbers = #tpu.dot_dimension_numbers<[1], [0], [0], [1], [0, 0, 1, 1], [], []>} : vector<8x128xbf16>, vector<128x128xbf16>, vector<8x128xf32> -> vector<8x128xf32>
    %31 = vector.extract_strided_slice %0 {offsets = [3, 0], sizes = [1, 128], strides = [1, 1]} : vector<4x128xf32> to vector<1x128xf32>
    %32 = vector.broadcast %31 : vector<1x128xf32> to vector<8x128xf32>
    %33 = arith.addf %30, %32 : vector<8x128xf32>
    %34 = arith.truncf %33 : vector<8x128xf32> to vector<8x128xbf16>
    %c0_18 = arith.constant 0 : index
    %c0_19 = arith.constant 0 : index
    %35 = vector.load %arg5[%c0_18, %c0_19] : memref<8x128xbf16, #tpu.memory_space<vmem>>, vector<8x128xbf16>
    tpu.vector_store %arg5[%c0_18, %c0_19], %34 {strides = array<i32>} : memref<8x128xbf16, #tpu.memory_space<vmem>>, vector<8x128xbf16>,
    return
  }
  func.func @transform_0(%arg0: i32) -> (i32, i32) {
    %c0_i32 = arith.constant 0 : i32
    %c0_i32_0 = arith.constant 0 : i32
    return %arg0, %c0_i32 : i32, i32
  }
  func.func @transform_1(%arg0: i32) -> (i32, i32) {
    %c0_i32 = arith.constant 0 : i32
    %c0_i32_0 = arith.constant 0 : i32
    %c0_i32_1 = arith.constant 0 : i32
    return %c0_i32, %c0_i32_0 : i32, i32
  }
  func.func @transform_2(%arg0: i32) -> (i32, i32, i32) {
    %c0_i32 = arith.constant 0 : i32
    %c0_i32_0 = arith.constant 0 : i32
    %c0_i32_1 = arith.constant 0 : i32
    %c0_i32_2 = arith.constant 0 : i32
    return %c0_i32, %c0_i32_0, %c0_i32_1 : i32, i32, i32
  }
  func.func @transform_3(%arg0: i32) -> (i32, i32) {
    %c0_i32 = arith.constant 0 : i32
    %c0_i32_0 = arith.constant 0 : i32
    %c0_i32_1 = arith.constant 0 : i32
    return %c0_i32, %c0_i32_0 : i32, i32
  }
  func.func @transform_4(%arg0: i32) -> (i32, i32) {
    %c0_i32 = arith.constant 0 : i32
    %c0_i32_0 = arith.constant 0 : i32
    return %arg0, %c0_i32 : i32, i32
  }
}

</mosaic_0001>

<bundles_post_ra>
// kernel: tpu_custom_call.1
= control target key start
LH: loop header
LB: loop body
LE: loop exit
PB: predicated region body
PF: predicated region fallthrough
CT: control target
= control target key end

     0   :  { %9 = vsyncpa [#allocation3], 0  ;;  %s830_s0 = inlined_call_operand.hbm [shape: bf16[8,8], index: 0, kind: input, shape index: {}]   ;;  %s831_s1 = inlined_call_operand.hbm [shape: bf16[8,128], index: 1, kind: input, shape index: {}]   ;;  %s832_s2 = inlined_call_operand.hbm [shape: bf16[3,128,128], index: 2, kind: input, shape index: {}]   ;;  %s833_s3 = inlined_call_operand.vmem [shape: f32[4,128], index: 3, kind: input, shape index: {}]   ;;  %s834_s4 = inlined_call_operand.hbm [shape: bf16[8,128], index: 4, kind: output, shape index: {}]  }
   0x1   :  { %10 = vsyncpa [#allocation6], 0 }
   0x2   :  { %11 = vsyncpa [#allocation4], 0  ;;  %s707_s15 = smov [#allocation5]   ;;  %s708_s17 = smov [#allocation2]  }
   0x3   :  { %s28_s16 = sshll.u32 %s707_s15, 4  ;;  %s18_s18 = sshll.u32 %s708_s17, 4  ;;  %s29_s16 = int_to_ptr.vmem [resolvable:$true] %s28_s16  ;;  %s19_s18 = int_to_ptr.vmem [resolvable:$true] %s18_s18 }
   0x4   :  { %s613_s21 = scalar_lea.hbm %s831_s1, 64 }
   0x5   :  { %p614_p0 = scmp.ne.s32.totalorder %s831_s1, %s613_s21  ;;  %p617_p1 = scmp.lt.u32.totalorder %s613_s21, %s831_s1 }
   0x7   :  { %p619_p2 = pnand %p617_p1, %p614_p0 }
   0x9   :  { %622 = shalt.err (!%p619_p2)
}
   0xa   :  { %s623_s26 = scalar_lea.vmem %s29_s16, 64  ;;  %p628_p4 = scmp.lt.s32.totalorder %s29_s16, %s29_s16 }
   0xb   :  { %p624_p3 = scmp.ne.s32.totalorder %s29_s16, %s623_s26  ;;  %p629_p5 = scmp.lt.s32.totalorder %s623_s26, %s623_s26 }
   0xd   :  { %p630_p6 = por %p629_p5, %p628_p4 }
   0xf   :  { %p631_p7 = pnand %p630_p6, %p624_p3 }
  0x11   :  { %634 = shalt.err (!%p631_p7)
}
  0x12   :  { %31 = dma.hbm_to_vmem [thread:$0]  %s831_s1, 64, %s29_s16, [#allocation6]  }
  0x13   :  { %s635_s5 = scalar_lea.hbm %s830_s0, 64 }
  0x14   :  { %p636_p8 = scmp.ne.s32.totalorder %s830_s0, %s635_s5  ;;  %p639_p9 = scmp.lt.u32.totalorder %s635_s5, %s830_s0 }
  0x16   :  { %p641_p10 = pnand %p639_p9, %p636_p8 }
  0x18   :  { %644 = shalt.err (!%p641_p10)
}
  0x19   :  { %s645_s10 = scalar_lea.vmem %s19_s18, 64  ;;  %p650_p12 = scmp.lt.s32.totalorder %s19_s18, %s19_s18 }
  0x1a   :  { %p646_p11 = scmp.ne.s32.totalorder %s19_s18, %s645_s10  ;;  %p651_p13 = scmp.lt.s32.totalorder %s645_s10, %s645_s10 }
  0x1c   :  { %p652_p0 = por %p651_p13, %p650_p12 }
  0x1e   :  { %p653_p1 = pnand %p652_p0, %p646_p11 }
  0x20   :  { %656 = shalt.err (!%p653_p1)
}
  0x21   :  { %21 = dma.hbm_to_vmem [thread:$0]  %s830_s0, 64, %s19_s18, [#allocation3]  }
  0x22   :  { %s709_s12 = smov [#allocation7]   ;;  %s657_s16 = scalar_lea.hbm %s832_s2, 3072 }
  0x23   :  { %s37_s13 = sshll.u32 %s709_s12, 4  ;;  %p658_p2 = scmp.ne.s32.totalorder %s832_s2, %s657_s16  ;;  %s38_s13 = int_to_ptr.vmem [resolvable:$true] %s37_s13 }
  0x24   :  { %p661_p3 = scmp.lt.u32.totalorder %s657_s16, %s832_s2 }
  0x26   :  { %p663_p4 = pnand %p661_p3, %p658_p2 }
  0x28   :  { %666 = shalt.err (!%p663_p4)
}
  0x29   :  { %s667_s22 = scalar_lea.vmem %s38_s13, 3072  ;;  %p672_p6 = scmp.lt.s32.totalorder %s38_s13, %s38_s13 }
  0x2a   :  { %p668_p5 = scmp.ne.s32.totalorder %s38_s13, %s667_s22  ;;  %p673_p7 = scmp.lt.s32.totalorder %s667_s22, %s667_s22 }
  0x2c   :  { %p674_p8 = por %p673_p7, %p672_p6 }
  0x2e   :  { %p675_p9 = pnand %p674_p8, %p668_p5 }
  0x30   :  { %678 = shalt.err (!%p675_p9)
}
  0x31   :  { %s710_s0 = smov 64   ;;  %s711_s18 = smov 4  }
  0x32   :  { %43 = dma.hbm_to_vmem [thread:$0]  %s832_s2, 3072, %s38_s13, [#allocation6], %s710_s0, %s710_s0, %s711_s18  }
  0x33   :  { %701 = dma.done.wait [#allocation3], 64  }
  0x34   :  { %702 = vsyncadd [#allocation3], 4294967232 }
  0x35   :  { %703 = dma.done.wait [#allocation6], 3136  }
  0x36   :  { %704 = vsyncadd [#allocation6], 4294964160  ;;  %v712_v0 = vmov 0.0   ;;  %vm713_vm0 = vmmov 0   ;;  %vm67_vm1 = vcmask 1043456   ;;  %vm63_vm2 = vcmask 64512  }
  0x37   :  { %515 = vmatprep.subr.bf16.mxu0 %v712_v0  ;;  %517 = vmatprep.mubr.msk.bf16.mxu0 %vm713_vm0, %v712_v0  ;;  %v58_v1 = vld [vmem:[#allocation5] sm:$0xf]  ;;  %v589_v3 = vld [vmem:[#allocation7] sm:$0xff]   ;;  %v57_v4 = vld [vmem:[#allocation2] sm:$0xf]  ;;  %v59_v18 = vlaneseq }
  0x38   :  { %521 = vmatprep.subr.bf16.mxu1 %v712_v0  ;;  %537 = vmatprep.mubr.msk.bf16.mxu1 %vm713_vm0, %v712_v0  ;;  %v69_v2 = vsel %vm67_vm1, %v58_v1, 0  ;;  %v590_v5 = vld [vmem:[#allocation7 + $0x8] sm:$0xff]   ;;  %v591_v6 = vld [vmem:[#allocation7 + $0x10] sm:$0xff]   ;;  %v592_v7 = vld [vmem:[#allocation7 + $0x18] sm:$0xff]  }
  0x39   :  { %516 = vmatpush3.bf16.msra.mxu0 %v69_v2  ;;  %522 = vmatpush3.bf16.msra.mxu1 %v589_v3  ;;  %v593_v8 = vld [vmem:[#allocation7 + $0x20] sm:$0xff]   ;;  %v594_v9 = vld [vmem:[#allocation7 + $0x28] sm:$0xff]   ;;  %v595_v10 = vld [vmem:[#allocation7 + $0x30] sm:$0xff]   ;;  %v799_v19 = vshrl.u32 %v59_v18, 7 }
  0x3a   :  { %541 = vmatprep.subr.bf16.mxu0 %v712_v0  ;;  %523 = vmatprep.subr.bf16.mxu1 %v712_v0  ;;  %v596_v11 = vld [vmem:[#allocation7 + $0x38] sm:$0xff]   ;;  %v597_v12 = vld [vmem:[#allocation7 + $0x40] sm:$0xff]   ;;  %v598_v13 = vld [vmem:[#allocation7 + $0x48] sm:$0xff]  }
  0x3b   :  { %v599_v14 = vld [vmem:[#allocation7 + $0x50] sm:$0xff]   ;;  %v600_v15 = vld [vmem:[#allocation7 + $0x58] sm:$0xff]   ;;  %v601_v16 = vld [vmem:[#allocation7 + $0x60] sm:$0xff]   ;;  %v61_v20 = vsub.s32 0, %v799_v19  ;;  %v131_v38 = vsub.s32 1, %v799_v19  ;;  %v242_v49 = vsub.s32 2, %v799_v19 }
  0x3c   :  { %518 = vmatmul.mubr.msk.bf16.vlgmr.msra.gmra.mrb[0].mxu0 %vm63_vm2, %v57_v4  ;;  %v602_v17 = vld [vmem:[#allocation7 + $0x68] sm:$0xff]   ;;  %v56_v21 = vld [vmem:[%s833_s3] sm:$0xf]  ;;  %v603_v30 = vld [vmem:[#allocation7 + $0x70] sm:$0xff]   ;;  %v353_v58 = vsub.s32 3, %v799_v19  ;;  %s714_s3 = smov [#allocation8]  }
  0x3d   :  { %557 = vmatprep.mubr.msk.bf16.mxu0 %vm713_vm0, %v712_v0  ;;  %524 = vmatpush3.bf16.msra.mxu1 %v590_v5  ;;  %v62_v22 = vrot.slane %v56_v21, %v61_v20  ;;  %v604_v31 = vld [vmem:[#allocation7 + $0x78] sm:$0xff]   ;;  %v605_v32 = vld [vmem:[#allocation7 + $0x80] sm:$0xff]   ;;  %v606_v33 = vld [vmem:[#allocation7 + $0x88] sm:$0xff]   ;;  %v132_v39 = vrot.slane %v56_v21, %v131_v38  ;;  %v243_v50 = vrot.slane %v56_v21, %v242_v49  ;;  %s451_s26 = sshll.u32 %s714_s3, 4  ;;  %s452_s26 = int_to_ptr.vmem [resolvable:$true] %s451_s26 }
  0x3e   :  { %525 = vmatprep.subr.bf16.mxu1 %v712_v0  ;;  %542 = vmatpush3.bf16.msra.mxu0 %v597_v12  ;;  %v607_v34 = vld [vmem:[#allocation7 + $0x90] sm:$0xff]   ;;  %v608_v35 = vld [vmem:[#allocation7 + $0x98] sm:$0xff]   ;;  %v609_v36 = vld [vmem:[#allocation7 + $0xa0] sm:$0xff]   ;;  %v354_v59 = vrot.slane %v56_v21, %v353_v58  ;;  %s679_s27 = scalar_lea.vmem %s452_s26, 64  ;;  %p684_p11 = scmp.lt.s32.totalorder %s452_s26, %s452_s26 }
  0x3f   :  { %543 = vmatprep.subr.bf16.mxu0 %v712_v0  ;;  %v610_v37 = vld [vmem:[#allocation7 + $0xa8] sm:$0xff]   ;;  %v611_v47 = vld [vmem:[#allocation7 + $0xb0] sm:$0xff]   ;;  %v612_v48 = vld [vmem:[#allocation7 + $0xb8] sm:$0xff]   ;;  %p680_p10 = scmp.ne.s32.totalorder %s452_s26, %s679_s27  ;;  %p685_p12 = scmp.lt.s32.totalorder %s679_s27, %s679_s27 }
  0x41   :  { %526 = vmatpush3.bf16.msra.mxu1 %v591_v6  ;;  %p686_p13 = por %p685_p12, %p684_p11 }
  0x42   :  { %527 = vmatprep.subr.bf16.mxu1 %v712_v0  ;;  %544 = vmatpush3.bf16.msra.mxu0 %v598_v13 }
  0x43   :  { %545 = vmatprep.subr.bf16.mxu0 %v712_v0  ;;  %p687_p0 = pnand %p686_p13, %p680_p10 }
  0x45   :  { %528 = vmatpush3.bf16.msra.mxu1 %v592_v7 }
  0x46   :  { %529 = vmatprep.subr.bf16.mxu1 %v712_v0  ;;  %546 = vmatpush3.bf16.msra.mxu0 %v599_v14 }
  0x47   :  { %547 = vmatprep.subr.bf16.mxu0 %v712_v0 }
  0x49   :  { %530 = vmatpush3.bf16.msra.mxu1 %v593_v8 }
  0x4a   :  { %531 = vmatprep.subr.bf16.mxu1 %v712_v0  ;;  %548 = vmatpush3.bf16.msra.mxu0 %v600_v15 }
  0x4b   :  { %549 = vmatprep.subr.bf16.mxu0 %v712_v0 }
  0x4d   :  { %532 = vmatpush3.bf16.msra.mxu1 %v594_v9 }
  0x4e   :  { %533 = vmatprep.subr.bf16.mxu1 %v712_v0  ;;  %550 = vmatpush3.bf16.msra.mxu0 %v601_v16 }
  0x4f   :  { %551 = vmatprep.subr.bf16.mxu0 %v712_v0 }
  0x51   :  { %534 = vmatpush3.bf16.msra.mxu1 %v595_v10 }
  0x52   :  { %535 = vmatprep.subr.bf16.mxu1 %v712_v0  ;;  %552 = vmatpush3.bf16.msra.mxu0 %v602_v17 }
  0x53   :  { %553 = vmatprep.subr.bf16.mxu0 %v712_v0 }
  0x55   :  { %536 = vmatpush3.bf16.msra.mxu1 %v596_v11 }
  0x56   :  { %561 = vmatprep.subr.bf16.mxu1 %v712_v0  ;;  %554 = vmatpush3.bf16.msra.mxu0 %v603_v30 }
  0x57   :  { %555 = vmatprep.subr.bf16.mxu0 %v712_v0 }
  0x5a   :  { %556 = vmatpush3.bf16.msra.mxu0 %v604_v31 }
 0x10f   :  { %v105_v23 = vpop.f32.mrb[0].mxu0 }
 0x110   :  { %v106_v24 = vadd.f32 %v105_v23, %v62_v22  ;;  %v519_v25 = vpop.f32.mrb[1].mxu0 }
 0x111   :  { %v108_v26 = vpop.f32.mrb[2].mxu0 }
 0x112   :  { %v111_v27 = vmax.f32 %v106_v24, 0.0  ;;  %v520_v28 = vpop.f32.mrb[3].mxu0 }
 0x114   :  { %v112_v29 = vpack.c.bf16 %v111_v27, %v111_v27 }
 0x116   :  { %538 = vmatmul.mubr.bf16.vlgmr.msra.gmra.mrb[0].mxu1 %v112_v29 }
 0x117   :  { %577 = vmatprep.mubr.msk.bf16.mxu1 %vm713_vm0, %v712_v0  ;;  %562 = vmatpush3.bf16.msra.mxu1 %v605_v32 }
 0x118   :  { %563 = vmatprep.subr.bf16.mxu1 %v712_v0 }
 0x11b   :  { %564 = vmatpush3.bf16.msra.mxu1 %v606_v33 }
 0x11c   :  { %565 = vmatprep.subr.bf16.mxu1 %v712_v0 }
 0x11f   :  { %566 = vmatpush3.bf16.msra.mxu1 %v607_v34 }
 0x120   :  { %567 = vmatprep.subr.bf16.mxu1 %v712_v0 }
 0x123   :  { %568 = vmatpush3.bf16.msra.mxu1 %v608_v35 }
 0x124   :  { %569 = vmatprep.subr.bf16.mxu1 %v712_v0 }
 0x127   :  { %570 = vmatpush3.bf16.msra.mxu1 %v609_v36 }
 0x128   :  { %571 = vmatprep.subr.bf16.mxu1 %v712_v0 }
 0x12b   :  { %572 = vmatpush3.bf16.msra.mxu1 %v610_v37 }
 0x12c   :  { %573 = vmatprep.subr.bf16.mxu1 %v712_v0 }
 0x12f   :  { %574 = vmatpush3.bf16.msra.mxu1 %v611_v47 }
 0x130   :  { %575 = vmatprep.subr.bf16.mxu1 %v712_v0 }
 0x133   :  { %576 = vmatpush3.bf16.msra.mxu1 %v612_v48 }
 0x1e9   :  { %v215_v40 = vpop.f32.mrb[0].mxu1 }
 0x1ea   :  { %v216_v41 = vadd.f32 %v215_v40, %v132_v39  ;;  %v539_v42 = vpop.f32.mrb[1].mxu1 }
 0x1eb   :  { %v218_v43 = vpop.f32.mrb[2].mxu1 }
 0x1ec   :  { %v221_v44 = vmax.f32 %v216_v41, 0.0  ;;  %v540_v45 = vpop.f32.mrb[3].mxu1 }
 0x1ee   :  { %v222_v46 = vpack.c.bf16 %v221_v44, %v221_v44 }
 0x1f0   :  { %558 = vmatmul.mubr.bf16.vlgmr.msra.gmra.mrb[4].mxu0 %v222_v46 }
 0x2c3   :  { %v326_v51 = vpop.f32.mrb[4].mxu0 }
 0x2c4   :  { %v327_v52 = vadd.f32 %v326_v51, %v243_v50  ;;  %v559_v53 = vpop.f32.mrb[5].mxu0 }
 0x2c5   :  { %v329_v54 = vpop.f32.mrb[6].mxu0 }
 0x2c6   :  { %v332_v55 = vmax.f32 %v327_v52, 0.0  ;;  %v560_v56 = vpop.f32.mrb[7].mxu0 }
 0x2c8   :  { %v333_v57 = vpack.c.bf16 %v332_v55, %v332_v55 }
 0x2ca   :  { %578 = vmatmul.mubr.bf16.vlgmr.msra.gmra.mrb[4].mxu1 %v333_v57 }
 0x39d   :  { %v437_v60 = vpop.f32.mrb[4].mxu1 }
 0x39e   :  { %v438_v61 = vadd.f32 %v437_v60, %v354_v59  ;;  %v579_v62 = vpop.f32.mrb[5].mxu1 }
 0x39f   :  { %v440_v63 = vpop.f32.mrb[6].mxu1 }
 0x3a0   :  { %v443_v0 = vpack.c.bf16 %v438_v61, %v438_v61  ;;  %v580_v1 = vpop.f32.mrb[7].mxu1 }
 0x3a2   :  { %444 = vst [vmem:[#allocation8] sm:$0xf] %v443_v0 }
 0x3a3   :  { %690 = shalt.err (!%p687_p0)
}
 0x3a4   :  { %s691_s30 = scalar_lea.hbm %s834_s4, 64 }
 0x3a5   :  { %p692_p1 = scmp.ne.s32.totalorder %s834_s4, %s691_s30  ;;  %p695_p2 = scmp.lt.u32.totalorder %s691_s30, %s834_s4 }
 0x3a7   :  { %p697_p3 = pnand %p695_p2, %p692_p1 }
 0x3a9   :  { %700 = shalt.err (!%p697_p3)
}
 0x3aa   :  { %454 = dma.vmem_to_hbm [thread:$0]  %s452_s26, 64, %s834_s4, [#allocation4]  }
 0x3ab   :  { %705 = dma.done.wait [#allocation4], 64  }
 0x3ac   :  { %706 = vsyncadd [#allocation4], 4294967232 }
 0x3ad   :  { %458 = vsyncpa [#allocation3], 1 }
 0x3ae   :  { %459 = vsyncpa [#allocation6], 1 }
 0x3af   :  { %460 = vsyncpa [#allocation4], 1 }

</bundles_post_ra>
